<compile_context>
chip_gen: v5e
topology: v5e:2x2
jax: 0.10.0
libtpu: 0.0.40
codegen_flags: <defaults>
</compile_context>

<pallas_src>
import functools

import jax
import jax.numpy as jnp
from jax.experimental import pallas as pl
from jax.experimental.pallas import tpu as pltpu


def _deconv_bn_lrelu_kernel(x_ref, w_ref, scale_ref, shift_ref, o_ref, *, slope):
    # x_ref:     (1, Cin, TM)     activation tile (spatial on the lane axis)
    # w_ref:     (4*Cout, Cin)    fused per-tap weights, resident across the whole grid
    # scale_ref: (4*Cout, 1)      fused BN scale  = gamma / sqrt(var + eps)        (f32)
    # shift_ref: (4*Cout, 1)      fused shift     = (bias - mean) * scale + beta   (f32)
    # o_ref:     (1, 4*Cout, TM)  output tile (lane-dense)
    acc = jnp.dot(w_ref[...], x_ref[0], preferred_element_type=jnp.float32)   # (4*Cout, TM) f32
    y = acc * scale_ref[...] + shift_ref[...]                                 # f32 epilogue
    o_ref[0] = jnp.where(y >= 0.0, y, slope * y).astype(o_ref.dtype)


def _choose_tm(hw, n, cin, cout4, bpe_in, vmem_budget=20 * 1024 * 1024):
    """Pick a lane-aligned spatial tile width (columns per grid step)."""
    lane = 128
    hw_pad = pl.cdiv(hw, lane) * lane
    tm = lane
    for cand in (2048, 1024, 512, 256, 128):
        if cand > hw_pad:
            continue
        # double-buffered input + output tiles, plus resident weights/scale/shift
        need = 2 * cand * (cin * bpe_in + cout4 * 4) + cout4 * (cin * bpe_in + 8)
        if need <= vmem_budget:
            tm = cand
            break
    # Keep >= 2 parallel grid steps when possible so v7x's 2 TensorCores both get work.
    while n * pl.cdiv(hw, tm) < 2 and tm > lane:
        tm //= 2
    return tm


def deconvb_forward(x_nchw, weight, bias, gamma, beta, run_mean, run_var,
                    eps=1e-5, slope=0.2, compute_dtype=jnp.float32):
    """DeconvB forward. x_nchw: (N, Cin, H, W); weight: (Cin, Cout, 2, 2) (PyTorch layout)."""
    N, Cin, H, W = x_nchw.shape
    Cin_w, Cout, kH, kW = weight.shape
    assert Cin == Cin_w and kH == 2 and kW == 2

    out_dtype = x_nchw.dtype
    cout4 = kH * kW * Cout
    HW = H * W

    # Native-layout activations: (N, Cin, H*W). Pure reshape, spatial dim on the lane axis.
    x2 = x_nchw.reshape(N, Cin, HW).astype(compute_dtype)

    # Fused per-tap weight matrix: row (dh*kW + dw)*Cout + c  <-  weight[:, c, dh, dw].
    w_fused = jnp.transpose(weight, (2, 3, 1, 0)).reshape(cout4, Cin).astype(compute_dtype)

    # Conv bias + eval-mode BatchNorm folded into per-channel scale/shift (kept f32).
    scale = (gamma / jnp.sqrt(run_var + eps)).astype(jnp.float32)           # (Cout,)
    shift = ((bias - run_mean) * scale + beta).astype(jnp.float32)          # (Cout,)
    scale4 = jnp.tile(scale, kH * kW).reshape(cout4, 1)                     # row tap*Cout+c -> scale[c]
    shift4 = jnp.tile(shift, kH * kW).reshape(cout4, 1)

    # Spatial tiling along the lane axis.
    bpe_in = jnp.dtype(compute_dtype).itemsize
    TM = _choose_tm(HW, N, Cin, cout4, bpe_in)
    num_tiles = pl.cdiv(HW, TM)
    HW_pad = num_tiles * TM
    if HW_pad != HW:
        x2 = jnp.pad(x2, ((0, 0), (0, 0), (0, HW_pad - HW)))

    kern = functools.partial(_deconv_bn_lrelu_kernel, slope=slope)
    y = pl.pallas_call(
        kern,
        out_shape=jax.ShapeDtypeStruct((N, cout4, HW_pad), out_dtype),
        grid=(N, num_tiles),
        in_specs=[
            pl.BlockSpec((1, Cin, TM), lambda n, t: (n, 0, t)),      # activation tile
            pl.BlockSpec((cout4, Cin), lambda n, t: (0, 0)),         # fused weights (resident)
            pl.BlockSpec((cout4, 1), lambda n, t: (0, 0)),           # BN scale
            pl.BlockSpec((cout4, 1), lambda n, t: (0, 0)),           # BN shift
        ],
        out_specs=pl.BlockSpec((1, cout4, TM), lambda n, t: (n, 0, t)),
        compiler_params=pltpu.CompilerParams(
            dimension_semantics=("parallel", "parallel"),
            vmem_limit_bytes=32 * 1024 * 1024,
        ),
    )(x2, w_fused, scale4, shift4)

    # Single tap-interleave transpose, lands directly in NCHW:
    #   out[n, c, 2h+dh, 2w+dw] = y[n, (dh*2+dw)*Cout + c, h*W + w]
    y = y[:, :, :HW].reshape(N, kH, kW, Cout, H, W)
    y = jnp.transpose(y, (0, 3, 4, 1, 5, 2)).reshape(N, Cout, kH * H, kW * W)
    return y


def deconvb_reference(x, weight, bias, gamma, beta, run_mean, run_var, eps=1e-5, slope=0.2):
    """Pure-JAX reference matching PyTorch ConvTranspose2d + BatchNorm2d(eval) + LeakyReLU."""
    Cin, Cout, kH, kW = weight.shape
    s, p = 2, 0
    w_flip = weight[:, :, ::-1, ::-1]
    w_conv = jnp.transpose(w_flip, (1, 0, 2, 3))                  # OIHW
    y = jax.lax.conv_general_dilated(
        x, w_conv, window_strides=(1, 1),
        padding=[(kH - 1 - p, kH - 1 - p), (kW - 1 - p, kW - 1 - p)],
        lhs_dilation=(s, s),
        dimension_numbers=("NCHW", "OIHW", "NCHW"))
    y = y + bias[None, :, None, None]
    sc = gamma / jnp.sqrt(run_var + eps)
    y = (y - run_mean[None, :, None, None]) * sc[None, :, None, None] + beta[None, :, None, None]
    return jnp.where(y >= 0, y, slope * y)


if __name__ == "__main__":
    key = jax.random.PRNGKey(0)
    k_x, k_w, k_b, k_g, k_be, k_m, k_v = jax.random.split(key, 7)

    N, Cin, Cout, H, W = 2, 4, 8, 16, 16

    x = jax.random.normal(k_x, (N, Cin, H, W), dtype=jnp.float32)
    weight = 0.1 * jax.random.normal(k_w, (Cin, Cout, 2, 2), dtype=jnp.float32)   # (in, out, kH, kW)
    bias = 0.1 * jax.random.normal(k_b, (Cout,), dtype=jnp.float32)
    gamma = 0.5 + jax.random.uniform(k_g, (Cout,), dtype=jnp.float32)
    beta = 0.1 * jax.random.normal(k_be, (Cout,), dtype=jnp.float32)
    run_mean = 0.1 * jax.random.normal(k_m, (Cout,), dtype=jnp.float32)
    run_var = 0.5 + jax.random.uniform(k_v, (Cout,), dtype=jnp.float32)

    ref = jax.block_until_ready(
        deconvb_reference(x, weight, bias, gamma, beta, run_mean, run_var))

    # f32 path: matches the PyTorch module semantics (tight tolerance).
    out = jax.block_until_ready(
        deconvb_forward(x, weight, bias, gamma, beta, run_mean, run_var))
    assert out.shape == (N, Cout, 2 * H, 2 * W), out.shape
    err_f32 = float(jnp.max(jnp.abs(out - ref)))
    assert err_f32 < 1e-4, f"f32 max abs error {err_f32}"

    # bf16 compute path (halved input HBM traffic; f32 accumulation + f32 epilogue/output).
    out_bf16 = jax.block_until_ready(
        deconvb_forward(x, weight, bias, gamma, beta, run_mean, run_var,
                        compute_dtype=jnp.bfloat16))
    err_bf16 = float(jnp.max(jnp.abs(out_bf16.astype(jnp.float32) - ref)))
    assert err_bf16 < 5e-2, f"bf16 max abs error {err_bf16}"

    print("KERNEL_OK")
</pallas_src>

<mosaic_0001>
module attributes {stable_mosaic.version = 11 : i64} {
  func.func @_deconv_bn_lrelu_kernel(%arg0: i32, %arg1: i32, %arg2: memref<1x4x256xf32, #tpu.memory_space<vmem>>, %arg3: memref<32x4xf32, #tpu.memory_space<vmem>>, %arg4: memref<32x1xf32, #tpu.memory_space<vmem>>, %arg5: memref<32x1xf32, #tpu.memory_space<vmem>>, %arg6: memref<1x32x256xf32, #tpu.memory_space<vmem>>) attributes {dimension_semantics = [#tpu.dimension_semantics<parallel>, #tpu.dimension_semantics<parallel>], iteration_bounds = array<i64: 2, 1>, scalar_prefetch = 0 : i64, scratch_operands = 0 : i64, tpu.core_type = #tpu.core_type<tc>, window_params = [{transform_indices = @transform_0, window_bounds = array<i64: 1, 4, 256>}, {pipeline_mode = #tpu.pipeline_mode<synchronous>, transform_indices = @transform_1, window_bounds = array<i64: 32, 4>}, {pipeline_mode = #tpu.pipeline_mode<synchronous>, transform_indices = @transform_2, window_bounds = array<i64: 32, 1>}, {pipeline_mode = #tpu.pipeline_mode<synchronous>, transform_indices = @transform_3, window_bounds = array<i64: 32, 1>}, {transform_indices = @transform_4, window_bounds = array<i64: 1, 32, 256>}]} {
    %c0 = arith.constant 0 : index
    %c0_0 = arith.constant 0 : index
    %0 = vector.load %arg3[%c0, %c0_0] : memref<32x4xf32, #tpu.memory_space<vmem>>, vector<32x4xf32>
    %c0_1 = arith.constant 0 : index
    %c0_2 = arith.constant 0 : index
    %c0_3 = arith.constant 0 : index
    %1 = vector.load %arg2[%c0_1, %c0_2, %c0_3] : memref<1x4x256xf32, #tpu.memory_space<vmem>>, vector<1x4x256xf32>
    %2 = vector.shape_cast %1 : vector<1x4x256xf32> to vector<4x256xf32>
    %cst = arith.constant dense<0.000000e+00> : vector<32x256xf32>
    %3 = tpu.matmul %0, %2, %cst {dimension_numbers = #tpu.dot_dimension_numbers<[1], [0], [0], [1], [0, 0, 1, 1], [], []>} : vector<32x4xf32>, vector<4x256xf32>, vector<32x256xf32> -> vector<32x256xf32>
    %c0_4 = arith.constant 0 : index
    %c0_5 = arith.constant 0 : index
    %4 = vector.load %arg4[%c0_4, %c0_5] : memref<32x1xf32, #tpu.memory_space<vmem>>, vector<32x1xf32>
    %5 = vector.broadcast %4 : vector<32x1xf32> to vector<32x256xf32>
    %6 = arith.mulf %3, %5 : vector<32x256xf32>
    %c0_6 = arith.constant 0 : index
    %c0_7 = arith.constant 0 : index
    %7 = vector.load %arg5[%c0_6, %c0_7] : memref<32x1xf32, #tpu.memory_space<vmem>>, vector<32x1xf32>
    %8 = vector.broadcast %7 : vector<32x1xf32> to vector<32x256xf32>
    %9 = arith.addf %6, %8 : vector<32x256xf32>
    %cst_8 = arith.constant 0.000000e+00 : f32
    %10 = vector.broadcast %cst_8 : f32 to vector<32x256xf32>
    %11 = arith.cmpf oge, %9, %10 : vector<32x256xf32>
    %cst_9 = arith.constant 2.000000e-01 : f32
    %12 = vector.broadcast %cst_9 : f32 to vector<32x256xf32>
    %13 = arith.mulf %12, %9 : vector<32x256xf32>
    %14 = arith.select %11, %9, %13 : vector<32x256xi1>, vector<32x256xf32>
    %c0_10 = arith.constant 0 : index
    %c0_11 = arith.constant 0 : index
    %c0_12 = arith.constant 0 : index
    %15 = vector.load %arg6[%c0_10, %c0_11, %c0_12] : memref<1x32x256xf32, #tpu.memory_space<vmem>>, vector<1x32x256xf32>
    %16 = vector.shape_cast %15 : vector<1x32x256xf32> to vector<32x256xf32>
    %17 = vector.shape_cast %14 : vector<32x256xf32> to vector<1x32x256xf32>
    tpu.vector_store %arg6[%c0_10, %c0_11, %c0_12], %17 {strides = array<i32>} : memref<1x32x256xf32, #tpu.memory_space<vmem>>, vector<1x32x256xf32>,
    return
  }
  func.func @transform_0(%arg0: i32, %arg1: i32) -> (i32, i32, i32) {
    %c0_i32 = arith.constant 0 : i32
    %c0_i32_0 = arith.constant 0 : i32
    return %arg0, %c0_i32, %arg1 : i32, i32, i32
  }
  func.func @transform_1(%arg0: i32, %arg1: i32) -> (i32, i32) {
    %c0_i32 = arith.constant 0 : i32
    %c0_i32_0 = arith.constant 0 : i32
    %c0_i32_1 = arith.constant 0 : i32
    return %c0_i32, %c0_i32_0 : i32, i32
  }
  func.func @transform_2(%arg0: i32, %arg1: i32) -> (i32, i32) {
    %c0_i32 = arith.constant 0 : i32
    %c0_i32_0 = arith.constant 0 : i32
    %c0_i32_1 = arith.constant 0 : i32
    return %c0_i32, %c0_i32_0 : i32, i32
  }
  func.func @transform_3(%arg0: i32, %arg1: i32) -> (i32, i32) {
    %c0_i32 = arith.constant 0 : i32
    %c0_i32_0 = arith.constant 0 : i32
    %c0_i32_1 = arith.constant 0 : i32
    return %c0_i32, %c0_i32_0 : i32, i32
  }
  func.func @transform_4(%arg0: i32, %arg1: i32) -> (i32, i32, i32) {
    %c0_i32 = arith.constant 0 : i32
    %c0_i32_0 = arith.constant 0 : i32
    return %arg0, %c0_i32, %arg1 : i32, i32, i32
  }
}

</mosaic_0001>

<bundles_post_ra>
// kernel: tpu_custom_call.1
= control target key start
LH: loop header
LB: loop body
LE: loop exit
PB: predicated region body
PF: predicated region fallthrough
CT: control target
= control target key end

     0   :  { %9 = vsyncpa [#allocation3], 0  ;;  %s857_s0 = inlined_call_operand.vmem [shape: f32[2,4,256], index: 0, kind: input, shape index: {}]   ;;  %s858_s1 = inlined_call_operand.vmem [shape: f32[32,4], index: 1, kind: input, shape index: {}]   ;;  %s859_s2 = inlined_call_operand.vmem [shape: f32[32,1], index: 2, kind: input, shape index: {}]   ;;  %s860_s3 = inlined_call_operand.vmem [shape: f32[32,1], index: 3, kind: input, shape index: {}]   ;;  %s861_s4 = inlined_call_operand.hbm [shape: f32[2,32,256], index: 4, kind: output, shape index: {}]  }
   0x1   :  { %11 = vsyncpa [#allocation3 + $0x1], 0  ;;  %s701_s15 = smov 0   ;;  %s703_s16 = smov 0  }
   0x2   :  { %s705_s17 = smov 0   ;;  %s707_s18 = smov 0  }
   0x3   :  { %s709_s19 = smov 0   ;;  %s711_s20 = smov 0  }
   0x4 LB: > { %s505_s21 = sadd.s32 4294967295, %s671_s20   ;;  %s506_s22 = sadd.s32 4294967294, %s671_s20   ;;  %s671_s20 = sphi %s711_s20, %s17_s20   ;;  %s667_s19 = sphi %s709_s19, %s868_s19   ;;  %s663_s18 = sphi %s707_s18, %s867_s18   ;;  %s659_s17 = sphi %s705_s17, %s866_s17   ;;  %s655_s16 = sphi %s703_s16, %s865_s16   ;;  %s651_s15 = sphi %s701_s15, %s864_s15  }
   0x5   : > { %s29_s23 = sadd.s32 1, %s667_s19  ;;  %s129_s24 = sadd.s32 1, %s659_s17 }
   0x6   : > { %p31_p0 = scmp.ge.s32.totalorder %s29_s23, 2  ;;  %p139_p1 = scmp.ne.s32.totalorder %s659_s17, %s655_s16 }
   0x7   : > { %p140_p2 = scmp.eq.s32.totalorder %s505_s21, 1  ;;  %p145_p3 = scmp.ne.s32.totalorder %s655_s16, %s651_s15 }
   0x8   : > { %s870_s23 = smov (%p31_p0, %s29_s23), 0  ;;  %p146_p5 = scmp.eq.s32.totalorder %s506_s22, 1 }
   0x9   : > { %p741_p4 = por %p140_p2, %p139_p1  ;;  %s124_s26 = ssub.s32 %s667_s19, %s870_s23 }
   0xa   : > { %p509_p6 = scmp.ge.s32.totalorder %s671_s20, 1  ;;  %p127_p7 = scmp.eq.s32.totalorder %s124_s26, 0 }
   0xb   : > { %p748_p8 = por %p146_p5, %p145_p3  ;;  %p186_p9 = scmp.lt.s32.totalorder %s671_s20, 3 }
   0xc   : > { %s754_s28 = scalar_select %p127_p7, %s659_s17, %s129_s24  }
   0xd   : > { %p187_p10 = pnand %p509_p6, %p186_p9 }
   0xe   : > { %p217_p11 = scmp.lt.s32.totalorder (!%p187_p10), %s663_s18, 1  ;;  %s213_s22 = sand.u32 (!%p187_p10), 1, %s655_s16  }
   0xf   : > { %190 = sbr.rel (%p187_p10) target bundleno = 187 (0xbb), region = 36  ;;  %s510_s24 = sshll.u32 (!%p187_p10), %s213_s22, 6 }
  0x10   : > { %s808_s26 = scalar_lea.vmem (!%p187_p10), [#allocation2], %s510_s24  ;;  %s529_s29 = sshll.u32 (!%p187_p10), %s663_s18, 6 }
  0x11   : > { %s422_s6 = scalar_lea.hbm (!%p187_p10), %s861_s4, %s529_s29  ;;  %s409_s8 = scalar_lea.sflag (!%p187_p10), [#allocation3], %s213_s22 }
  0x14   : > { %v314_v0 = vld [vmem:[%s859_s2 + $0x10] sm:$0xff]  ;;  %v312_v1 = vld [vmem:[%s859_s2] sm:$0xff]  ;;  %v673_v2 = vmov 0   ;;  %s218_s7 = scalar_select %p217_p11, %s663_s18, 1  ;;  %v315_v5 = vld [vmem:[%s859_s2 + $0x18] sm:$0xff]  ;;  %vm249_vm0 = vcmask 1043456  }
  0x15   : > { %591 = vset.pattern.permute.xlu1 %v673_v2  ;;  %590 = vset.pattern.permute.xlu0 %v673_v2  ;;  %v344_v3 = vld [vmem:[%s860_s3] sm:$0xff]  ;;  %v313_v6 = vld [vmem:[%s859_s2 + $0x8] sm:$0xff]  ;;  %vm236_vm1 = vcmask 31744   ;;  %v229_v9 = vld [vmem:[%s858_s1 + $0x10] sm:$0xff]  ;;  %s423_s18 = sshll.u32 %s808_s26, 4  ;;  %s424_s18 = int_to_ptr.vmem [resolvable:$true] %s423_s18 }
  0x16   : > { %328 = vperm.xlu1 %591, %v314_v0   ;;  %318 = vperm.xlu0 %590, %v312_v1   ;;  %s528_s10 = sshll.u32 %s218_s7, 3  ;;  %v345_v7 = vld [vmem:[%s860_s3 + $0x8] sm:$0xff]  ;;  %v227_v8 = vld [vmem:[%s858_s1] sm:$0xff]  ;;  %v347_v12 = vld [vmem:[%s860_s3 + $0x18] sm:$0xff]  ;;  %s425_s7 = sshll.u32 %s422_s6, 4  ;;  %s426_s7 = int_to_ptr.hbm [resolvable:$true] %s425_s7 }
  0x17   : > { %592 = vset.pattern.permute.xlu2 %v673_v2  ;;  %s224_s13 = scalar_lea.vmem %s857_s0, %s528_s10  ;;  %v346_v13 = vld [vmem:[%s860_s3 + $0x10] sm:$0xff]  ;;  %v228_v14 = vld [vmem:[%s858_s1 + $0x8] sm:$0xff]  ;;  %v230_v15 = vld [vmem:[%s858_s1 + $0x18] sm:$0xff]  ;;  %s607_s9 = sshra.s32 %s426_s7, 4  ;;  %s608_s9 = int_to_ptr.hbm [resolvable:$true] %s607_s9 }
  0x18   : > { %350 = vperm.xlu2 %592, %v344_v3   ;;  %v231_v4 = vld [vmem:[%s224_s13] sm:$0xff]  ;;  %s609_s10 = scalar_lea.hbm %s608_s9, 64  ;;  %s613_s13 = scalar_lea.hbm %s861_s4, 128 }
  0x19   : > { %233 = vst [vmem:[#allocation1] ss:$2 sm:$0xff] %v231_v4  ;;  %p610_p12 = scmp.ne.s32.totalorder %s608_s9, %s609_s10  ;;  %p614_p1 = scmp.lt.s32.totalorder %s608_s9, %s861_s4 }
  0x1a   : > { %p615_p2 = scmp.lt.s32.totalorder %s613_s13, %s609_s10 }
  0x1b   : > { %p611_p13 = pnand %p610_p12, %p741_p4 }
  0x1c   : > { %p616_p3 = por %p615_p2, %p614_p1 }
  0x1d   : > { %p612_p0 = pneg %p611_p13 }
  0x1e   : > { %333 = vperm.xlu1 %591, %v315_v5   ;;  %323 = vperm.xlu0 %590, %v313_v6  }
  0x1f   : > { %p617_p5 = pnand %p616_p3, %p612_p0 }
  0x20   : > { %355 = vperm.xlu2 %592, %v345_v7   ;;  %v234_v10 = vld.sshfl [vmem:[#allocation1] sm:$0xff pattern:$0x75316420]  ;;  %v235_v11 = vld.sshfl [vmem:[#allocation1 + $0x8] sm:$0xff pattern:$0x75316420] }
  0x21   : > { %513 = vmatpush.msk.msra.mxu0 %vm249_vm0, %v234_v10  ;;  %530 = vmatpush.msk.msra.mxu2 %vm249_vm0, %v234_v10 }
  0x22   : > { %518 = vmatpush.msk.msra.mxu1 %vm249_vm0, %v235_v11  ;;  %531 = vmatpush.msk.msra.mxu3 %vm249_vm0, %v235_v11 }
  0x23   : > { %514 = vmatmul.msk.f32.vlgmr.msra.gmra.mxu0 %vm236_vm1, %v227_v8  ;;  %516 = vmatmul.msk.f32.vlgmr.msra.gmra.mxu2 %vm236_vm1, %v229_v9 }
  0x24   : > { %519 = vmatmul.msk.f32.vlgmr.msra.gmra.mxu1 %vm236_vm1, %v227_v8  ;;  %521 = vmatmul.msk.f32.vlgmr.msra.gmra.mxu3 %vm236_vm1, %v229_v9 }
  0x26   : > { %365 = vperm.xlu1 %591, %v347_v12   ;;  %360 = vperm.xlu0 %590, %v346_v13  }
  0x2b   : > { %515 = vmatmul.msk.f32.gmra.mxu0 %vm236_vm1, %v228_v14  ;;  %517 = vmatmul.msk.f32.gmra.mxu2 %vm236_vm1, %v230_v15 }
  0x2c   : > { %520 = vmatmul.msk.f32.gmra.mxu1 %vm236_vm1, %v228_v14  ;;  %522 = vmatmul.msk.f32.gmra.mxu3 %vm236_vm1, %v230_v15 }
  0x72   : > { %v351_v19 = vpop.permute.xlu2 %350 }
  0x7a   : > { %v356_v41 = vpop.permute.xlu2 %355 }
  0x88   : > { %v319_v16 = vpop.permute.xlu0 %318  ;;  %v329_v17 = vpop.permute.xlu1 %328 }
  0x90   : > { %v324_v18 = vpop.permute.xlu0 %323  ;;  %v334_v27 = vpop.permute.xlu1 %333 }
  0x98   : > { %v361_v33 = vpop.permute.xlu0 %360  ;;  %v366_v55 = vpop.permute.xlu1 %365 }
  0xa0   : > { %v271_v20 = vpop.f32.mrf.mxu0 }
  0xa1   : > { %v336_v21 = vmul.f32 %v319_v16, %v271_v20  ;;  %v300_v22 = vpop.f32.mrf.mxu1 }
  0xa2   : > { %v337_v23 = vmul.f32 %v319_v16, %v300_v22 }
  0xa3   : > { %v368_v24 = vadd.f32 %v351_v19, %v336_v21 }
  0xa4   : > { %v369_v25 = vadd.f32 %v351_v19, %v337_v23 }
  0xa5   : > { %vm376_vm2 = vcmp.ge.f32.partialorder %v368_v24, 0.0  ;;  %v384_v26 = vmul.f32 0.2, %v368_v24 }
  0xa6   : > { %vm377_vm3 = vcmp.ge.f32.partialorder %v369_v25, 0.0  ;;  %v385_v28 = vmul.f32 0.2, %v369_v25  ;;  %v277_v29 = vpop.f32.mrf.mxu2 }
  0xa7   : > { %v392_v30 = vsel %vm376_vm2, %v368_v24, %v384_v26  ;;  %v340_v31 = vmul.f32 %v329_v17, %v277_v29  ;;  %v306_v32 = vpop.f32.mrf.mxu3 }
  0xa8   : > { %400 = vst [vmem:[%s808_s26] sm:$0xff] %v392_v30  ;;  %v393_v34 = vsel %vm377_vm3, %v369_v25, %v385_v28  ;;  %v341_v35 = vmul.f32 %v329_v17, %v306_v32  ;;  %v274_v36 = vpop.f32.mrf.mxu0 }
  0xa9   : > { %401 = vst [vmem:[%s808_s26 + $0x8] sm:$0xff] %v393_v34  ;;  %v372_v37 = vadd.f32 %v361_v33, %v340_v31  ;;  %v338_v38 = vmul.f32 %v324_v18, %v274_v36  ;;  %v303_v39 = vpop.f32.mrf.mxu1 }
  0xaa   : > { %v373_v40 = vadd.f32 %v361_v33, %v341_v35  ;;  %v339_v42 = vmul.f32 %v324_v18, %v303_v39 }
  0xab   : > { %vm380_vm4 = vcmp.ge.f32.partialorder %v372_v37, 0.0  ;;  %v388_v43 = vmul.f32 0.2, %v372_v37  ;;  %v370_v44 = vadd.f32 %v356_v41, %v338_v38 }
  0xac   : > { %vm381_vm5 = vcmp.ge.f32.partialorder %v373_v40, 0.0  ;;  %v389_v45 = vmul.f32 0.2, %v373_v40  ;;  %v371_v46 = vadd.f32 %v356_v41, %v339_v42 }
  0xad   : > { %v396_v47 = vsel %vm380_vm4, %v372_v37, %v388_v43  ;;  %vm378_vm6 = vcmp.ge.f32.partialorder %v370_v44, 0.0  ;;  %v386_v48 = vmul.f32 0.2, %v370_v44 }
  0xae   : > { %404 = vst [vmem:[%s808_s26 + $0x20] sm:$0xff] %v396_v47  ;;  %v397_v49 = vsel %vm381_vm5, %v373_v40, %v389_v45  ;;  %vm379_vm7 = vcmp.ge.f32.partialorder %v371_v46, 0.0  ;;  %v387_v50 = vmul.f32 0.2, %v371_v46  ;;  %v280_v51 = vpop.f32.mrf.mxu2 }
  0xaf   : > { %405 = vst [vmem:[%s808_s26 + $0x28] sm:$0xff] %v397_v49  ;;  %v394_v52 = vsel %vm378_vm6, %v370_v44, %v386_v48  ;;  %v342_v53 = vmul.f32 %v334_v27, %v280_v51  ;;  %v309_v54 = vpop.f32.mrf.mxu3 }
  0xb0   : > { %402 = vst [vmem:[%s808_s26 + $0x10] sm:$0xff] %v394_v52  ;;  %v395_v56 = vsel %vm379_vm7, %v371_v46, %v387_v50  ;;  %v343_v57 = vmul.f32 %v334_v27, %v309_v54 }
  0xb1   : > { %403 = vst [vmem:[%s808_s26 + $0x18] sm:$0xff] %v395_v56  ;;  %v374_v58 = vadd.f32 %v366_v55, %v342_v53 }
  0xb2   : > { %v375_v59 = vadd.f32 %v366_v55, %v343_v57 }
  0xb3   : > { %vm382_vm8 = vcmp.ge.f32.partialorder %v374_v58, 0.0  ;;  %v390_v60 = vmul.f32 0.2, %v374_v58 }
  0xb4   : > { %vm383_vm9 = vcmp.ge.f32.partialorder %v375_v59, 0.0  ;;  %v391_v61 = vmul.f32 0.2, %v375_v59 }
  0xb5   : > { %v398_v62 = vsel %vm382_vm8, %v374_v58, %v390_v60 }
  0xb6   : > { %406 = vst [vmem:[%s808_s26 + $0x30] sm:$0xff] %v398_v62  ;;  %v399_v63 = vsel %vm383_vm9, %v375_v59, %v391_v61 }
  0xb7   : > { %407 = vst [vmem:[%s808_s26 + $0x38] sm:$0xff] %v399_v63 }
  0xb8   : > { %620 = shalt.err (!%p617_p5)
}
  0xb9   : > { %s674_s22 = smov 256   ;;  %s675_s24 = smov 16  }
  0xba   : > { %532 = dma.vmem_to_hbm [thread:$0]  (%p741_p4), %s424_s18, 1024, %s426_s7, %s409_s8, %s674_s22, %s674_s22, %s675_s24  }
  0xbb PF: > { %p538_p6 = scmp.ge.s32.totalorder %s671_s20, 2  ;;  %s440_s26 = sand.u32 1, %s651_s15  }
  0xbc   : > { %s441_s29 = scalar_lea.sflag [#allocation3], %s440_s26 }
  0xbd   : > { %p535_p7 = pnand %p538_p6, %p748_p8 }
  0xbf   : > { %p536_p9 = pneg %p535_p7 }
  0xc1   : > { %646 = dma.done.wait (%p536_p9), %s441_s29, 1024  }
  0xc2   : > { %648 = vsyncadd (%p536_p9), %s441_s29, 4294966272  ;;  %s17_s20 = sadd.s32 1, %s671_s20   ;;  %s864_s15 = smov %s655_s16 }
  0xc3   : > { %p14_p10 = scmp.ge.s32.totalorder %s17_s20, 4   ;;  %s865_s16 = smov %s659_s17 }
  0xc4   : > { %s866_s17 = smov %s754_s28  ;;  %s867_s18 = smov %s667_s19 }
  0xc5   : > { %s868_s19 = smov %s870_s23  ;;  %16 = sbr.rel (!%p14_p10) target bundleno = 4 (0x4), region = 71 }
  0xca   :  { %447 = vsyncpa [#allocation3], 1 }
  0xcb   :  { %449 = vsyncpa [#allocation3 + $0x1], 1 }

</bundles_post_ra>
